<compile_context>
chip_gen: v5e
topology: v5e:2x2
jax: 0.10.0
libtpu: 0.0.40
codegen_flags: <defaults>
</compile_context>

<pallas_src>
import jax
import jax.numpy as jnp
from jax.experimental import pallas as pl
from jax.experimental.pallas import tpu as pltpu


def _round_up(x, m):
    return (x + m - 1) // m * m


# --------------------------------------------------------------- kernels ----

def conv_stats_kernel(p_ref, w_ref, out_ref, sum_ref, sq_ref):
    """One M-tile: 3x3 conv as ONE MXU contraction + BN partial sums.

    p_ref:   (TM, 9*Cin)     lane-concatenated 3x3 im2col patches (orig. res.)
    w_ref:   (9*Cin, 4*Cout) sub-pixel weights (4 output parities on lanes)
    out_ref: (TM, 4*Cout)    pre-BN conv output, parity-major lanes
    sum_ref: (1, 1, 4*Cout)  per-tile channel sums
    sq_ref:  (1, 1, 4*Cout)  per-tile channel sums of squares
    """
    acc = jnp.dot(p_ref[...], w_ref[...], preferred_element_type=jnp.float32)
    out_ref[...] = acc
    sum_ref[...] = jnp.sum(acc, axis=0).reshape(1, 1, -1)
    sq_ref[...] = jnp.sum(acc * acc, axis=0).reshape(1, 1, -1)


def bn_relu_kernel(y_ref, scale_ref, shift_ref, o_ref):
    """Pass 2: y * scale + shift then ReLU, on a lane-dense (128-lane) view."""
    o_ref[...] = jnp.maximum(y_ref[...] * scale_ref[...] + shift_ref[...], 0.0)


# ------------------------------------------------------- weight folding -----

# For output-row parity a, original 3x3 kernel row ki reads padded-original row
# p + _TAP_OFFSET[a][ki]  (nearest-2x upsample folded into the weights).
_TAP_OFFSET = ((0, 1, 1),   # a == 0
               (1, 1, 2))   # a == 1


def _subpixel_weights(w_oihw):
    """(Cout, Cin, 3, 3) -> (9*Cin, 4*Cout) sub-pixel weight matrix.

    Column block par = 2*a + b holds the effective 2x2 kernel for output
    parity (a, b), zero-padded into the 3x3 patch layout so all four parities
    come out of a single matmul.
    """
    Cout, Cin = w_oihw.shape[0], w_oihw.shape[1]
    w_t = jnp.transpose(w_oihw, (2, 3, 1, 0)).astype(jnp.float32)  # (3,3,Cin,Cout)
    w_big = jnp.zeros((9 * Cin, 4 * Cout), jnp.float32)
    for a in range(2):
        for b in range(2):
            par = 2 * a + b
            for ki in range(3):
                dr = _TAP_OFFSET[a][ki]
                for kj in range(3):
                    dc = _TAP_OFFSET[b][kj]
                    t = dr * 3 + dc
                    w_big = w_big.at[t * Cin:(t + 1) * Cin,
                                     par * Cout:(par + 1) * Cout].add(w_t[ki, kj])
    return w_big


# -------------------------------------------------------------- forward -----

@jax.jit
def up_conv_forward(x_nchw, w_oihw, bias, gamma, beta):
    """x_nchw: (N, Cin, H, W) -> (N, Cout, 2H, 2W), matching PyTorch up_conv."""
    del bias  # exactly cancelled by train-mode BatchNorm mean subtraction
    N, Cin, H, W = x_nchw.shape
    Cout = w_oihw.shape[0]
    M0 = N * H * W                 # original-resolution pixel count
    lane = 4 * Cout                # 4 output parities stacked on lanes

    # ---- glue (plain JAX, all at ORIGINAL resolution; no upsampled tensor) ----
    x = jnp.transpose(x_nchw, (0, 2, 3, 1)).astype(jnp.float32)    # (N,H,W,Cin)
    x_pad = jnp.pad(x, ((0, 0), (1, 1), (1, 1), (0, 0)))           # (N,H+2,W+2,Cin)
    # Lane-concatenated 3x3 im2col -> single (M0, 9*Cin) operand.
    cols = [x_pad[:, dr:dr + H, dc:dc + W, :]
            for dr in range(3) for dc in range(3)]
    patches = jnp.concatenate(cols, axis=-1).reshape(M0, 9 * Cin)

    w_big = _subpixel_weights(w_oihw)                              # (9*Cin, lane)

    # ---- tiling over M (grid, double-buffered, megacore-parallel) ----
    pack = 128 // lane if 128 % lane == 0 else 1   # rows packed per 128 lanes
    align = 8 * pack
    TM = _round_up(min(4096, _round_up(M0, align)), align)
    M_pad = _round_up(M0, TM)
    num_tiles = M_pad // TM
    # Zero padding rows contribute 0 to sums and sums-of-squares -> stats exact.
    patches = jnp.pad(patches, ((0, M_pad - M0), (0, 0)))

    cparams = pltpu.CompilerParams(
        dimension_semantics=("parallel",),
        vmem_limit_bytes=32 * 1024 * 1024,
    )

    # ---- pass 1: conv (one contraction per tile) + BN partial sums ----
    cost1 = pl.CostEstimate(
        flops=2 * M_pad * (9 * Cin) * lane + 3 * M_pad * lane,
        transcendentals=0,
        bytes_accessed=4 * (M_pad * 9 * Cin + 9 * Cin * lane
                            + M_pad * lane + 2 * num_tiles * lane),
    )
    conv_out, psum, psq = pl.pallas_call(
        conv_stats_kernel,
        grid=(num_tiles,),
        in_specs=[
            pl.BlockSpec((TM, 9 * Cin), lambda i: (i, 0)),
            pl.BlockSpec((9 * Cin, lane), lambda i: (0, 0)),   # resident weights
        ],
        out_specs=(
            pl.BlockSpec((TM, lane), lambda i: (i, 0)),
            pl.BlockSpec((1, 1, lane), lambda i: (i, 0, 0)),
            pl.BlockSpec((1, 1, lane), lambda i: (i, 0, 0)),
        ),
        out_shape=(
            jax.ShapeDtypeStruct((M_pad, lane), jnp.float32),
            jax.ShapeDtypeStruct((num_tiles, 1, lane), jnp.float32),
            jax.ShapeDtypeStruct((num_tiles, 1, lane), jnp.float32),
        ),
        compiler_params=cparams,
        cost_estimate=cost1,
    )(patches, w_big)

    # ---- exact global batch stats (tiny reduction over tiles + parities) ----
    count = jnp.float32(4 * M0)                      # N * 2H * 2W per channel
    ch_sum = jnp.sum(psum, axis=(0, 1)).reshape(4, Cout).sum(axis=0)
    ch_sq = jnp.sum(psq, axis=(0, 1)).reshape(4, Cout).sum(axis=0)
    mean = ch_sum / count
    var = jnp.maximum(ch_sq / count - mean * mean, 0.0)   # biased, like PyTorch
    inv_std = jax.lax.rsqrt(var + 1e-5)
    scale_o = gamma.astype(jnp.float32) * inv_std
    shift_o = beta.astype(jnp.float32) - mean * scale_o

    # ---- pass 2: normalize + ReLU on a lane-dense reinterpretation ----
    rows2 = M_pad // pack
    lane2 = lane * pack
    TM2 = TM // pack
    y_view = conv_out.reshape(rows2, lane2)          # free: same contiguous buffer
    scale2 = jnp.tile(scale_o, 4 * pack).reshape(1, lane2)
    shift2 = jnp.tile(shift_o, 4 * pack).reshape(1, lane2)
    cost2 = pl.CostEstimate(
        flops=3 * rows2 * lane2, transcendentals=0,
        bytes_accessed=4 * (2 * rows2 * lane2 + 2 * lane2),
    )
    out2 = pl.pallas_call(
        bn_relu_kernel,
        grid=(num_tiles,),
        in_specs=[
            pl.BlockSpec((TM2, lane2), lambda i: (i, 0)),
            pl.BlockSpec((1, lane2), lambda i: (0, 0)),
            pl.BlockSpec((1, lane2), lambda i: (0, 0)),
        ],
        out_specs=pl.BlockSpec((TM2, lane2), lambda i: (i, 0)),
        out_shape=jax.ShapeDtypeStruct((rows2, lane2), jnp.float32),
        compiler_params=cparams,
        cost_estimate=cost2,
    )(y_view, scale2, shift2)

    # ---- depth-to-space (interleave the 4 parities) + back to NCHW ----
    y = out2.reshape(M_pad, lane)[:M0].reshape(N, H, W, 2, 2, Cout)
    y = jnp.transpose(y, (0, 1, 3, 2, 4, 5)).reshape(N, 2 * H, 2 * W, Cout)
    return jnp.transpose(y, (0, 3, 1, 2))


# ------------------------------------------------------------- reference ----

def _reference(x_nchw, w_oihw, bias, gamma, beta):
    """Pure-JAX reference: upsample -> 3x3 conv -> train-mode BN -> ReLU."""
    N, Cin, H, W = x_nchw.shape
    Cout = w_oihw.shape[0]
    u = jnp.repeat(jnp.repeat(x_nchw, 2, axis=2), 2, axis=3)
    up = jnp.pad(u, ((0, 0), (0, 0), (1, 1), (1, 1)))
    conv = jnp.zeros((N, Cout, 2 * H, 2 * W), jnp.float32)
    for ki in range(3):
        for kj in range(3):
            patch = up[:, :, ki:ki + 2 * H, kj:kj + 2 * W]
            conv = conv + jnp.einsum("ncij,oc->noij", patch,
                                     w_oihw[:, :, ki, kj], precision="highest")
    conv = conv + bias[None, :, None, None]
    mean = conv.mean(axis=(0, 2, 3), keepdims=True)
    var = ((conv - mean) ** 2).mean(axis=(0, 2, 3), keepdims=True)
    y = gamma[None, :, None, None] * (conv - mean) * jax.lax.rsqrt(var + 1e-5)
    y = y + beta[None, :, None, None]
    return jnp.maximum(y, 0.0)


if __name__ == "__main__":
    # Small shapes consistent with the module: ch_in=4, ch_out=8.
    N, Cin, H, W = 2, 4, 16, 16
    Cout = 8

    key = jax.random.PRNGKey(0)
    kx, kw, kb, kg, kbe = jax.random.split(key, 5)

    x = jax.random.normal(kx, (N, Cin, H, W), dtype=jnp.float32)
    w_oihw = jax.random.normal(kw, (Cout, Cin, 3, 3), dtype=jnp.float32) * 0.1
    bias = jax.random.normal(kb, (Cout,), dtype=jnp.float32) * 0.1
    gamma = 1.0 + 0.1 * jax.random.normal(kg, (Cout,), dtype=jnp.float32)
    beta = 0.1 * jax.random.normal(kbe, (Cout,), dtype=jnp.float32)

    out = up_conv_forward(x, w_oihw, bias, gamma, beta)
    out = jax.block_until_ready(out)
    assert out.shape == (N, Cout, 2 * H, 2 * W), out.shape

    ref = _reference(x, w_oihw, bias, gamma, beta)
    max_err = float(jnp.max(jnp.abs(out - ref)))
    assert max_err < 2e-2, f"max |err| = {max_err}"

    print("KERNEL_OK")
</pallas_src>

<mosaic_0001>
module attributes {stable_mosaic.version = 11 : i64} {
  func.func @conv_stats_kernel(%arg0: i32, %arg1: memref<512x36xf32, #tpu.memory_space<vmem>>, %arg2: memref<36x32xf32, #tpu.memory_space<vmem>>, %arg3: memref<512x32xf32, #tpu.memory_space<vmem>>, %arg4: memref<1x1x32xf32, #tpu.memory_space<vmem>>, %arg5: memref<1x1x32xf32, #tpu.memory_space<vmem>>) attributes {dimension_semantics = [#tpu.dimension_semantics<parallel>], iteration_bounds = array<i64: 1>, scalar_prefetch = 0 : i64, scratch_operands = 0 : i64, tpu.core_type = #tpu.core_type<tc>, window_params = [{transform_indices = @transform_0, window_bounds = array<i64: 512, 36>}, {pipeline_mode = #tpu.pipeline_mode<synchronous>, transform_indices = @transform_1, window_bounds = array<i64: 36, 32>}, {transform_indices = @transform_2, window_bounds = array<i64: 512, 32>}, {transform_indices = @transform_3, window_bounds = array<i64: 1, 1, 32>}, {transform_indices = @transform_4, window_bounds = array<i64: 1, 1, 32>}]} {
    %c0 = arith.constant 0 : index
    %c0_0 = arith.constant 0 : index
    %0 = vector.load %arg1[%c0, %c0_0] : memref<512x36xf32, #tpu.memory_space<vmem>>, vector<512x36xf32>
    %c0_1 = arith.constant 0 : index
    %c0_2 = arith.constant 0 : index
    %1 = vector.load %arg2[%c0_1, %c0_2] : memref<36x32xf32, #tpu.memory_space<vmem>>, vector<36x32xf32>
    %cst = arith.constant dense<0.000000e+00> : vector<512x32xf32>
    %2 = tpu.matmul %0, %1, %cst {dimension_numbers = #tpu.dot_dimension_numbers<[1], [0], [0], [1], [0, 0, 1, 1], [], []>} : vector<512x36xf32>, vector<36x32xf32>, vector<512x32xf32> -> vector<512x32xf32>
    %c0_3 = arith.constant 0 : index
    %c0_4 = arith.constant 0 : index
    %3 = vector.load %arg3[%c0_3, %c0_4] : memref<512x32xf32, #tpu.memory_space<vmem>>, vector<512x32xf32>
    tpu.vector_store %arg3[%c0_3, %c0_4], %2 {strides = array<i32>} : memref<512x32xf32, #tpu.memory_space<vmem>>, vector<512x32xf32>,
    %cst_5 = arith.constant dense<0.000000e+00> : vector<32xf32>
    %4 = vector.multi_reduction <add>, %2, %cst_5 [0] : vector<512x32xf32> to vector<32xf32>
    %5 = vector.shape_cast %4 : vector<32xf32> to vector<1x1x32xf32>
    %c0_6 = arith.constant 0 : index
    %c0_7 = arith.constant 0 : index
    %c0_8 = arith.constant 0 : index
    %6 = vector.load %arg4[%c0_6, %c0_7, %c0_8] : memref<1x1x32xf32, #tpu.memory_space<vmem>>, vector<1x1x32xf32>
    tpu.vector_store %arg4[%c0_6, %c0_7, %c0_8], %5 {strides = array<i32>} : memref<1x1x32xf32, #tpu.memory_space<vmem>>, vector<1x1x32xf32>,
    %7 = arith.mulf %2, %2 : vector<512x32xf32>
    %cst_9 = arith.constant dense<0.000000e+00> : vector<32xf32>
    %8 = vector.multi_reduction <add>, %7, %cst_9 [0] : vector<512x32xf32> to vector<32xf32>
    %9 = vector.shape_cast %8 : vector<32xf32> to vector<1x1x32xf32>
    %c0_10 = arith.constant 0 : index
    %c0_11 = arith.constant 0 : index
    %c0_12 = arith.constant 0 : index
    %10 = vector.load %arg5[%c0_10, %c0_11, %c0_12] : memref<1x1x32xf32, #tpu.memory_space<vmem>>, vector<1x1x32xf32>
    tpu.vector_store %arg5[%c0_10, %c0_11, %c0_12], %9 {strides = array<i32>} : memref<1x1x32xf32, #tpu.memory_space<vmem>>, vector<1x1x32xf32>,
    return
  }
  func.func @transform_0(%arg0: i32) -> (i32, i32) {
    %c0_i32 = arith.constant 0 : i32
    %c0_i32_0 = arith.constant 0 : i32
    return %arg0, %c0_i32 : i32, i32
  }
  func.func @transform_1(%arg0: i32) -> (i32, i32) {
    %c0_i32 = arith.constant 0 : i32
    %c0_i32_0 = arith.constant 0 : i32
    %c0_i32_1 = arith.constant 0 : i32
    return %c0_i32, %c0_i32_0 : i32, i32
  }
  func.func @transform_2(%arg0: i32) -> (i32, i32) {
    %c0_i32 = arith.constant 0 : i32
    %c0_i32_0 = arith.constant 0 : i32
    return %arg0, %c0_i32 : i32, i32
  }
  func.func @transform_3(%arg0: i32) -> (i32, i32, i32) {
    %c0_i32 = arith.constant 0 : i32
    %c0_i32_0 = arith.constant 0 : i32
    %c0_i32_1 = arith.constant 0 : i32
    return %arg0, %c0_i32, %c0_i32_0 : i32, i32, i32
  }
  func.func @transform_4(%arg0: i32) -> (i32, i32, i32) {
    %c0_i32 = arith.constant 0 : i32
    %c0_i32_0 = arith.constant 0 : i32
    %c0_i32_1 = arith.constant 0 : i32
    return %arg0, %c0_i32, %c0_i32_0 : i32, i32, i32
  }
}

module attributes {stable_mosaic.version = 11 : i64} {
  func.func @bn_relu_kernel(%arg0: i32, %arg1: memref<128x128xf32, #tpu.memory_space<vmem>>, %arg2: memref<1x128xf32, #tpu.memory_space<vmem>>, %arg3: memref<1x128xf32, #tpu.memory_space<vmem>>, %arg4: memref<128x128xf32, #tpu.memory_space<vmem>>) attributes {dimension_semantics = [#tpu.dimension_semantics<parallel>], iteration_bounds = array<i64: 1>, scalar_prefetch = 0 : i64, scratch_operands = 0 : i64, tpu.core_type = #tpu.core_type<tc>, window_params = [{transform_indices = @transform_0, window_bounds = array<i64: 128, 128>}, {pipeline_mode = #tpu.pipeline_mode<synchronous>, transform_indices = @transform_1, window_bounds = array<i64: 1, 128>}, {pipeline_mode = #tpu.pipeline_mode<synchronous>, transform_indices = @transform_2, window_bounds = array<i64: 1, 128>}, {transform_indices = @transform_3, window_bounds = array<i64: 128, 128>}]} {
    %c0 = arith.constant 0 : index
    %c0_0 = arith.constant 0 : index
    %0 = vector.load %arg1[%c0, %c0_0] : memref<128x128xf32, #tpu.memory_space<vmem>>, vector<128x128xf32>
    %c0_1 = arith.constant 0 : index
    %c0_2 = arith.constant 0 : index
    %1 = vector.load %arg2[%c0_1, %c0_2] : memref<1x128xf32, #tpu.memory_space<vmem>>, vector<1x128xf32>
    %2 = vector.broadcast %1 : vector<1x128xf32> to vector<128x128xf32>
    %3 = arith.mulf %0, %2 : vector<128x128xf32>
    %c0_3 = arith.constant 0 : index
    %c0_4 = arith.constant 0 : index
    %4 = vector.load %arg3[%c0_3, %c0_4] : memref<1x128xf32, #tpu.memory_space<vmem>>, vector<1x128xf32>
    %5 = vector.broadcast %4 : vector<1x128xf32> to vector<128x128xf32>
    %6 = arith.addf %3, %5 : vector<128x128xf32>
    %cst = arith.constant 0.000000e+00 : f32
    %7 = vector.broadcast %cst : f32 to vector<128x128xf32>
    %8 = arith.maximumf %6, %7 : vector<128x128xf32>
    %c0_5 = arith.constant 0 : index
    %c0_6 = arith.constant 0 : index
    %9 = vector.load %arg4[%c0_5, %c0_6] : memref<128x128xf32, #tpu.memory_space<vmem>>, vector<128x128xf32>
    tpu.vector_store %arg4[%c0_5, %c0_6], %8 {strides = array<i32>} : memref<128x128xf32, #tpu.memory_space<vmem>>, vector<128x128xf32>,
    return
  }
  func.func @transform_0(%arg0: i32) -> (i32, i32) {
    %c0_i32 = arith.constant 0 : i32
    %c0_i32_0 = arith.constant 0 : i32
    return %arg0, %c0_i32 : i32, i32
  }
  func.func @transform_1(%arg0: i32) -> (i32, i32) {
    %c0_i32 = arith.constant 0 : i32
    %c0_i32_0 = arith.constant 0 : i32
    %c0_i32_1 = arith.constant 0 : i32
    return %c0_i32, %c0_i32_0 : i32, i32
  }
  func.func @transform_2(%arg0: i32) -> (i32, i32) {
    %c0_i32 = arith.constant 0 : i32
    %c0_i32_0 = arith.constant 0 : i32
    %c0_i32_1 = arith.constant 0 : i32
    return %c0_i32, %c0_i32_0 : i32, i32
  }
  func.func @transform_3(%arg0: i32) -> (i32, i32) {
    %c0_i32 = arith.constant 0 : i32
    %c0_i32_0 = arith.constant 0 : i32
    return %arg0, %c0_i32 : i32, i32
  }
}

</mosaic_0001>

<bundles_post_ra>
// kernel: tile.13
= control target key start
LH: loop header
LB: loop body
LE: loop exit
PB: predicated region body
PF: predicated region fallthrough
CT: control target
= control target key end

     0   :  { %s28_s0 = inlined_call_operand.vmem [shape: f32[8], index: 0, kind: input, shape index: {}]   ;;  %s29_s1 = inlined_call_operand.vmem [shape: f32[16,8], index: 1, kind: output, shape index: {}]  }
   0x1   :  { %v4_v0 = vld [vmem:[%s28_s0] ss:$0 sm:$0xff] }
   0x2   :  { %5 = vst [vmem:[%s29_s1] sm:$0xff] %v4_v0 }
   0x3   :  { %8 = vst [vmem:[%s29_s1 + $0x8] sm:$0xff] %v4_v0 }

// kernel: tile.14
= control target key start
LH: loop header
LB: loop body
LE: loop exit
PB: predicated region body
PF: predicated region fallthrough
CT: control target
= control target key end

     0   :  { %s131_s10 = smov 120   ;;  %s132_s11 = smov 104   ;;  %vm3_vm0 = vcmask 64512   ;;  %vm9_vm1 = vcmask 1048512   ;;  %vm15_vm2 = vcmask 982912   ;;  %vm21_vm3 = vcmask 917312   ;;  %s207_s0 = inlined_call_operand.vmem [shape: f32[16,8], index: 0, kind: input, shape index: {}]   ;;  %s208_s1 = inlined_call_operand.vmem [shape: f32[1,128], index: 1, kind: output, shape index: {}]  }
   0x1   :  { %v101_v0 = vld [vmem:[%s207_s0 + $0xf] sm:$0x1]   ;;  %v103_v1 = vld [vmem:[%s207_s0 + $0xd] sm:$0x1]   ;;  %v105_v2 = vld [vmem:[%s207_s0 + $0xb] sm:$0x1]  }
   0x2   :  { %7 = vrot.lane.b32.xlu0 %v101_v0, %s131_s10  ;;  %19 = vrot.lane.b32.xlu1 %v103_v1, %s132_s11  ;;  %s133_s14 = smov 88   ;;  %v102_v3 = vld [vmem:[%s207_s0 + $0xe] sm:$0x1]   ;;  %v104_v4 = vld [vmem:[%s207_s0 + $0xc] sm:$0x1]   ;;  %s134_s19 = smov 112  }
   0x3   :  { %31 = vrot.lane.b32.xlu2 %v105_v2, %s133_s14  ;;  %s135_s20 = smov 96   ;;  %v106_v5 = vld [vmem:[%s207_s0 + $0xa] sm:$0x1]   ;;  %s136_s23 = smov 80   ;;  %v107_v6 = vld [vmem:[%s207_s0 + $0x9] sm:$0x1]  }
   0x4   :  { %v108_v7 = vld [vmem:[%s207_s0 + $0x8] sm:$0x1]   ;;  %s137_s28 = smov 72   ;;  %s138_s29 = smov 64   ;;  %v109_v8 = vld [vmem:[%s207_s0 + $0x7] sm:$0x1]  }
   0x5   :  { %s139_s3 = smov 56   ;;  %v110_v9 = vld [vmem:[%s207_s0 + $0x6] sm:$0x1]   ;;  %v111_v10 = vld [vmem:[%s207_s0 + $0x5] sm:$0x1]   ;;  %s140_s8 = smov 48  }
   0x6   :  { %s141_s9 = smov 40   ;;  %v112_v11 = vld [vmem:[%s207_s0 + $0x4] sm:$0x1]   ;;  %s142_s12 = smov 32   ;;  %v113_v12 = vld [vmem:[%s207_s0 + $0x3] sm:$0x1]  }
   0x7   :  { %v114_v13 = vld [vmem:[%s207_s0 + $0x2] sm:$0x1]   ;;  %s143_s17 = smov 24   ;;  %s144_s18 = smov 16   ;;  %v115_v14 = vld [vmem:[%s207_s0 + $0x1] sm:$0x1]  }
   0x8   :  { %s145_s21 = smov 8   ;;  %v2_v15 = vld [vmem:[%s207_s0] sm:$0x1]   ;;  %vm27_vm4 = vcmask 851712   ;;  %vm33_vm5 = vcmask 786112   ;;  %vm39_vm6 = vcmask 720512  }
   0x9   :  { %4 = vst.msk [vmem:[#allocation0] sm:$0x1] %vm3_vm0, %v2_v15   ;;  %vm45_vm7 = vcmask 654912   ;;  %vm51_vm8 = vcmask 589312   ;;  %vm57_vm9 = vcmask 523712   ;;  %vm63_vm10 = vcmask 458112  }
   0xa   :  { %13 = vrot.lane.b32.xlu0 %v102_v3, %s134_s19  ;;  %25 = vrot.lane.b32.xlu1 %v104_v4, %s135_s20  ;;  %vm69_vm11 = vcmask 392512   ;;  %vm75_vm12 = vcmask 326912   ;;  %vm81_vm13 = vcmask 261312   ;;  %vm87_vm14 = vcmask 195712  }
   0xb   :  { %37 = vrot.lane.b32.xlu2 %v106_v5, %s136_s23  ;;  %vm93_vm15 = vcmask 130112  }
  0x12   :  { %43 = vrot.lane.b32.xlu0 %v107_v6, %s137_s28  ;;  %49 = vrot.lane.b32.xlu1 %v108_v7, %s138_s29 }
  0x13   :  { %55 = vrot.lane.b32.xlu2 %v109_v8, %s139_s3 }
  0x1a   :  { %61 = vrot.lane.b32.xlu0 %v110_v9, %s140_s8  ;;  %67 = vrot.lane.b32.xlu1 %v111_v10, %s141_s9 }
  0x1b   :  { %73 = vrot.lane.b32.xlu2 %v112_v11, %s142_s12 }
  0x22   :  { %79 = vrot.lane.b32.xlu0 %v113_v12, %s143_s17  ;;  %85 = vrot.lane.b32.xlu1 %v114_v13, %s144_s18 }
  0x23   :  { %91 = vrot.lane.b32.xlu2 %v115_v14, %s145_s21 }
  0x5d   :  { %v32_v16 = vpop.permute.xlu2 %31  }
  0x65   :  { %v38_v17 = vpop.permute.xlu2 %37  }
  0x6d   :  { %v56_v18 = vpop.permute.xlu2 %55  }
  0x74   :  { %v8_v19 = vpop.permute.xlu0 %7   ;;  %v20_v20 = vpop.permute.xlu1 %19  }
  0x75   :  { %10 = vst.msk [vmem:[#allocation0] sm:$0x1] %vm9_vm1, %v8_v19   ;;  %v74_v21 = vpop.permute.xlu2 %73  }
  0x7c   :  { %v14_v22 = vpop.permute.xlu0 %13   ;;  %v26_v23 = vpop.permute.xlu1 %25  }
  0x7d   :  { %16 = vst.msk [vmem:[#allocation0] sm:$0x1] %vm15_vm2, %v14_v22   ;;  %v92_v24 = vpop.permute.xlu2 %91  }
  0x7e   :  { %22 = vst.msk [vmem:[#allocation0] sm:$0x1] %vm21_vm3, %v20_v20  }
  0x7f   :  { %28 = vst.msk [vmem:[#allocation0] sm:$0x1] %vm27_vm4, %v26_v23  }
  0x80   :  { %34 = vst.msk [vmem:[#allocation0] sm:$0x1] %vm33_vm5, %v32_v16  }
  0x81   :  { %40 = vst.msk [vmem:[#allocation0] sm:$0x1] %vm39_vm6, %v38_v17  }
  0x84   :  { %v44_v25 = vpop.permute.xlu0 %43   ;;  %v50_v26 = vpop.permute.xlu1 %49  }
  0x85   :  { %46 = vst.msk [vmem:[#allocation0] sm:$0x1] %vm45_vm7, %v44_v25  }
  0x86   :  { %52 = vst.msk [vmem:[#allocation0] sm:$0x1] %vm51_vm8, %v50_v26  }
  0x87   :  { %58 = vst.msk [vmem:[#allocation0] sm:$0x1] %vm57_vm9, %v56_v18  }
  0x8c   :  { %v62_v27 = vpop.permute.xlu0 %61   ;;  %v68_v28 = vpop.permute.xlu1 %67  }
  0x8d   :  { %64 = vst.msk [vmem:[#allocation0] sm:$0x1] %vm63_vm10, %v62_v27  }
  0x8e   :  { %70 = vst.msk [vmem:[#allocation0] sm:$0x1] %vm69_vm11, %v68_v28  }
  0x8f   :  { %76 = vst.msk [vmem:[#allocation0] sm:$0x1] %vm75_vm12, %v74_v21  }
  0x94   :  { %v80_v29 = vpop.permute.xlu0 %79   ;;  %v86_v30 = vpop.permute.xlu1 %85  }
  0x95   :  { %82 = vst.msk [vmem:[#allocation0] sm:$0x1] %vm81_vm13, %v80_v29  }
  0x96   :  { %88 = vst.msk [vmem:[#allocation0] sm:$0x1] %vm87_vm14, %v86_v30  }
  0x97   :  { %94 = vst.msk [vmem:[#allocation0] sm:$0x1] %vm93_vm15, %v92_v24  }
  0x9e   :  { %v97_v31 = vld [vmem:[#allocation0] sm:$0x1] }
  0x9f   :  { %100 = vst [vmem:[%s208_s1] sm:$0x1] %v97_v31 }

// kernel: up_conv_forward.3
= control target key start
LH: loop header
LB: loop body
LE: loop exit
PB: predicated region body
PF: predicated region fallthrough
CT: control target
= control target key end

     0   :  { %s248_s0 = inlined_call_operand.vmem [shape: f32[128,128], index: 0, kind: input, shape index: {}]   ;;  %s249_s1 = inlined_call_operand.vmem [shape: f32[1,128], index: 1, kind: input, shape index: {}]   ;;  %s250_s2 = inlined_call_operand.vmem [shape: f32[1,128], index: 2, kind: input, shape index: {}]   ;;  %s251_s3 = inlined_call_operand.vmem [shape: f32[128,128], index: 3, kind: output, shape index: {}]  }
   0x1   :  { %v14_v0 = vld [vmem:[%s248_s0] sm:$0xff]  ;;  %v15_v3 = vld [vmem:[%s248_s0 + $0x8] sm:$0xff]  ;;  %v16_v6 = vld [vmem:[%s248_s0 + $0x10] sm:$0xff] }
   0x2   :  { %v106_v1 = vld [vmem:[%s249_s1] ss:$0 sm:$0xff]  ;;  %v17_v7 = vld [vmem:[%s248_s0 + $0x18] sm:$0xff]  ;;  %v19_v12 = vld [vmem:[%s248_s0 + $0x28] sm:$0xff] }
   0x3   :  { %v137_v2 = vld [vmem:[%s250_s2] ss:$0 sm:$0xff]  ;;  %v34_v4 = vmul.f32 %v106_v1, %v14_v0  ;;  %v35_v5 = vmul.f32 %v106_v1, %v15_v3  ;;  %v36_v9 = vmul.f32 %v106_v1, %v16_v6  ;;  %v37_v10 = vmul.f32 %v106_v1, %v17_v7  ;;  %v20_v13 = vld [vmem:[%s248_s0 + $0x30] sm:$0xff]  ;;  %v21_v14 = vld [vmem:[%s248_s0 + $0x38] sm:$0xff] }
   0x4   :  { %v18_v8 = vld [vmem:[%s248_s0 + $0x20] sm:$0xff]  ;;  %v39_v17 = vmul.f32 %v106_v1, %v19_v12  ;;  %v40_v18 = vmul.f32 %v106_v1, %v20_v13  ;;  %v41_v22 = vmul.f32 %v106_v1, %v21_v14  ;;  %v23_v24 = vld [vmem:[%s248_s0 + $0x48] sm:$0xff]  ;;  %v24_v29 = vld [vmem:[%s248_s0 + $0x50] sm:$0xff] }
   0x5   :  { %v38_v11 = vmul.f32 %v106_v1, %v18_v8  ;;  %v54_v15 = vadd.f32 %v137_v2, %v34_v4  ;;  %v55_v16 = vadd.f32 %v137_v2, %v35_v5  ;;  %v56_v19 = vadd.f32 %v137_v2, %v36_v9  ;;  %v22_v23 = vld [vmem:[%s248_s0 + $0x40] sm:$0xff]  ;;  %v25_v30 = vld [vmem:[%s248_s0 + $0x58] sm:$0xff]  ;;  %v27_v35 = vld [vmem:[%s248_s0 + $0x68] sm:$0xff] }
   0x6   :  { %v57_v20 = vadd.f32 %v137_v2, %v37_v10  ;;  %v59_v27 = vadd.f32 %v137_v2, %v39_v17  ;;  %v60_v28 = vadd.f32 %v137_v2, %v40_v18  ;;  %v26_v31 = vld [vmem:[%s248_s0 + $0x60] sm:$0xff]  ;;  %v61_v34 = vadd.f32 %v137_v2, %v41_v22  ;;  %v28_v36 = vld [vmem:[%s248_s0 + $0x70] sm:$0xff]  ;;  %v29_v41 = vld [vmem:[%s248_s0 + $0x78] sm:$0xff] }
   0x7   :  { %v58_v21 = vadd.f32 %v137_v2, %v38_v11  ;;  %v70_v25 = vmax.f32 %v54_v15, 0.0  ;;  %v71_v26 = vmax.f32 %v55_v16, 0.0  ;;  %v72_v32 = vmax.f32 %v56_v19, 0.0 }
   0x8   :  { %v73_v33 = vmax.f32 %v57_v20, 0.0  ;;  %v75_v38 = vmax.f32 %v59_v27, 0.0  ;;  %v42_v39 = vmul.f32 %v106_v1, %v22_v23  ;;  %v43_v40 = vmul.f32 %v106_v1, %v23_v24 }
   0x9   :  { %86 = vst [vmem:[%s251_s3] sm:$0xff] %v70_v25  ;;  %v74_v37 = vmax.f32 %v58_v21, 0.0  ;;  %v76_v42 = vmax.f32 %v60_v28, 0.0  ;;  %v44_v43 = vmul.f32 %v106_v1, %v24_v29  ;;  %v45_v44 = vmul.f32 %v106_v1, %v25_v30 }
   0xa   :  { %87 = vst [vmem:[%s251_s3 + $0x8] sm:$0xff] %v71_v26  ;;  %v46_v45 = vmul.f32 %v106_v1, %v26_v31  ;;  %v62_v46 = vadd.f32 %v137_v2, %v42_v39  ;;  %v63_v47 = vadd.f32 %v137_v2, %v43_v40  ;;  %v47_v48 = vmul.f32 %v106_v1, %v27_v35 }
   0xb   :  { %88 = vst [vmem:[%s251_s3 + $0x10] sm:$0xff] %v72_v32  ;;  %v48_v49 = vmul.f32 %v106_v1, %v28_v36  ;;  %v77_v50 = vmax.f32 %v61_v34, 0.0  ;;  %v64_v51 = vadd.f32 %v137_v2, %v44_v43  ;;  %v65_v52 = vadd.f32 %v137_v2, %v45_v44 }
   0xc   :  { %89 = vst [vmem:[%s251_s3 + $0x18] sm:$0xff] %v73_v33  ;;  %v49_v53 = vmul.f32 %v106_v1, %v29_v41  ;;  %v78_v54 = vmax.f32 %v62_v46, 0.0  ;;  %v66_v55 = vadd.f32 %v137_v2, %v46_v45  ;;  %v79_v56 = vmax.f32 %v63_v47, 0.0 }
   0xd   :  { %90 = vst [vmem:[%s251_s3 + $0x20] sm:$0xff] %v74_v37  ;;  %v67_v57 = vadd.f32 %v137_v2, %v47_v48  ;;  %v80_v58 = vmax.f32 %v64_v51, 0.0  ;;  %v68_v59 = vadd.f32 %v137_v2, %v48_v49  ;;  %v81_v60 = vmax.f32 %v65_v52, 0.0 }
   0xe   :  { %91 = vst [vmem:[%s251_s3 + $0x28] sm:$0xff] %v75_v38  ;;  %v69_v61 = vadd.f32 %v137_v2, %v49_v53  ;;  %v82_v62 = vmax.f32 %v66_v55, 0.0 }
   0xf   :  { %92 = vst [vmem:[%s251_s3 + $0x30] sm:$0xff] %v76_v42  ;;  %v83_v63 = vmax.f32 %v67_v57, 0.0  ;;  %v84_v0 = vmax.f32 %v68_v59, 0.0 }
  0x10   :  { %93 = vst [vmem:[%s251_s3 + $0x38] sm:$0xff] %v77_v50  ;;  %v85_v1 = vmax.f32 %v69_v61, 0.0 }
  0x11   :  { %94 = vst [vmem:[%s251_s3 + $0x40] sm:$0xff] %v78_v54 }
  0x12   :  { %95 = vst [vmem:[%s251_s3 + $0x48] sm:$0xff] %v79_v56 }
  0x13   :  { %96 = vst [vmem:[%s251_s3 + $0x50] sm:$0xff] %v80_v58 }
  0x14   :  { %97 = vst [vmem:[%s251_s3 + $0x58] sm:$0xff] %v81_v60 }
  0x15   :  { %98 = vst [vmem:[%s251_s3 + $0x60] sm:$0xff] %v82_v62 }
  0x16   :  { %99 = vst [vmem:[%s251_s3 + $0x68] sm:$0xff] %v83_v63 }
  0x17   :  { %100 = vst [vmem:[%s251_s3 + $0x70] sm:$0xff] %v84_v0 }
  0x18   :  { %101 = vst [vmem:[%s251_s3 + $0x78] sm:$0xff] %v85_v1 }

// kernel: up_conv_forward.2
= control target key start
LH: loop header
LB: loop body
LE: loop exit
PB: predicated region body
PF: predicated region fallthrough
CT: control target
= control target key end

     0   :  { %vm276_vm0 = vcmask 1043456   ;;  %vm83_vm1 = vcmask 293888   ;;  %vm489_vm2 = vcmask 261120   ;;  %vm687_vm3 = vcmask 253952   ;;  %s1959_s1 = inlined_call_operand.vmem [shape: f32[36,32], index: 1, kind: input, shape index: {}]   ;;  %s1960_s0 = inlined_call_operand.vmem [shape: f32[512,36], index: 0, kind: input, shape index: {}]   ;;  %s1961_s2 = inlined_call_operand.vmem [shape: f32[512,32], index: 2, kind: output, shape index: {0}]   ;;  %s1962_s3 = inlined_call_operand.vmem [shape: f32[1,1,32], index: 3, kind: output, shape index: {1}]   ;;  %s1963_s4 = inlined_call_operand.vmem [shape: f32[1,1,32], index: 4, kind: output, shape index: {2}]  }
   0x1   :  { %v82_v0 = vld [vmem:[%s1959_s1 + $0x20] sm:$0xf]  ;;  %v81_v1 = vld [vmem:[%s1959_s1 + $0x18] sm:$0xff]  ;;  %v80_v2 = vld [vmem:[%s1959_s1 + $0x10] sm:$0xff] }
   0x2   :  { %899 = vmatpush.msk.msra.mxu0 %vm276_vm0, %v82_v0  ;;  %964 = vmatpush.msk.msra.mxu1 %vm276_vm0, %v82_v0  ;;  %v79_v3 = vld [vmem:[%s1959_s1 + $0x8] sm:$0xff]  ;;  %v78_v4 = vld [vmem:[%s1959_s1] sm:$0xff]  ;;  %v16_v9 = vld [vmem:[%s1960_s0 + $0x10] sm:$0xff] }
   0x3   :  { %965 = vmatpush.msk.msra.mxu2 %vm276_vm0, %v82_v0  ;;  %966 = vmatpush.msk.msra.mxu3 %vm276_vm0, %v82_v0  ;;  %v14_v5 = vld [vmem:[%s1960_s0] sm:$0xff]  ;;  %v15_v7 = vld [vmem:[%s1960_s0 + $0x8] sm:$0xff]  ;;  %v32_v10 = vld [vmem:[%s1960_s0 + $0x90] sm:$0xff] }
   0x4   :  { %292 = vmatpush.msra.mxu0 %v81_v1  ;;  %967 = vmatpush.msra.mxu1 %v81_v1  ;;  %v30_v6 = vld [vmem:[%s1960_s0 + $0x80] sm:$0xff]  ;;  %v31_v8 = vld [vmem:[%s1960_s0 + $0x88] sm:$0xff]  ;;  %v17_v11 = vld [vmem:[%s1960_s0 + $0x18] sm:$0xff] }
   0x5   :  { %968 = vmatpush.msra.mxu2 %v81_v1  ;;  %969 = vmatpush.msra.mxu3 %v81_v1  ;;  %v33_v12 = vld [vmem:[%s1960_s0 + $0x98] sm:$0xff]  ;;  %v46_v13 = vld [vmem:[%s1960_s0 + $0x100] sm:$0xff]  ;;  %v47_v16 = vld [vmem:[%s1960_s0 + $0x108] sm:$0xff] }
   0x6   :  { %293 = vmatpush.msra.mxu0 %v80_v2  ;;  %970 = vmatpush.msra.mxu1 %v80_v2  ;;  %v18_v14 = vld [vmem:[%s1960_s0 + $0x20] sm:$0xff]  ;;  %v19_v17 = vld [vmem:[%s1960_s0 + $0x28] sm:$0xff]  ;;  %v48_v19 = vld [vmem:[%s1960_s0 + $0x110] sm:$0xff] }
   0x7   :  { %971 = vmatpush.msra.mxu2 %v80_v2  ;;  %972 = vmatpush.msra.mxu3 %v80_v2  ;;  %v34_v15 = vld [vmem:[%s1960_s0 + $0xa0] sm:$0xff]  ;;  %v35_v18 = vld [vmem:[%s1960_s0 + $0xa8] sm:$0xff]  ;;  %v20_v20 = vld [vmem:[%s1960_s0 + $0x30] sm:$0xff] }
   0x8   :  { %294 = vmatpush.msra.mxu0 %v79_v3  ;;  %973 = vmatpush.msra.mxu1 %v79_v3  ;;  %v36_v21 = vld [vmem:[%s1960_s0 + $0xb0] sm:$0xff]  ;;  %v49_v22 = vld [vmem:[%s1960_s0 + $0x118] sm:$0xff]  ;;  %v50_v25 = vld [vmem:[%s1960_s0 + $0x120] sm:$0xff] }
   0x9   :  { %974 = vmatpush.msra.mxu2 %v79_v3  ;;  %975 = vmatpush.msra.mxu3 %v79_v3  ;;  %v21_v23 = vld [vmem:[%s1960_s0 + $0x38] sm:$0xff]  ;;  %v62_v26 = vld [vmem:[%s1960_s0 + $0x180] sm:$0xff]  ;;  %v51_v29 = vld [vmem:[%s1960_s0 + $0x128] sm:$0xff] }
   0xa   :  { %295 = vmatpush.msra.mxu0 %v78_v4  ;;  %976 = vmatpush.msra.mxu1 %v78_v4  ;;  %v37_v24 = vld [vmem:[%s1960_s0 + $0xb8] sm:$0xff]  ;;  %v22_v27 = vld [vmem:[%s1960_s0 + $0x40] sm:$0xff]  ;;  %v63_v30 = vld [vmem:[%s1960_s0 + $0x188] sm:$0xff] }
   0xb   :  { %900 = vmatmul.msk.f32.vlgmr.msra.gmra.mxu0 %vm83_vm1, %v14_v5  ;;  %916 = vmatmul.msk.f32.vlgmr.msra.gmra.mxu1 %vm83_vm1, %v30_v6  ;;  %v38_v28 = vld [vmem:[%s1960_s0 + $0xc0] sm:$0xff]  ;;  %v23_v31 = vld [vmem:[%s1960_s0 + $0x48] sm:$0xff]  ;;  %v52_v33 = vld [vmem:[%s1960_s0 + $0x130] sm:$0xff] }
   0xc   :  { %977 = vmatpush.msra.mxu2 %v78_v4  ;;  %978 = vmatpush.msra.mxu3 %v78_v4  ;;  %v39_v32 = vld [vmem:[%s1960_s0 + $0xc8] sm:$0xff]  ;;  %v64_v34 = vld [vmem:[%s1960_s0 + $0x190] sm:$0xff]  ;;  %v53_v37 = vld [vmem:[%s1960_s0 + $0x138] sm:$0xff] }
   0xd   :  { %932 = vmatmul.msk.f32.vlgmr.msra.gmra.mxu2 %vm83_vm1, %v46_v13  ;;  %948 = vmatmul.msk.f32.vlgmr.msra.gmra.mxu3 %vm83_vm1, %v62_v26  ;;  %v24_v35 = vld [vmem:[%s1960_s0 + $0x50] sm:$0xff]  ;;  %v65_v38 = vld [vmem:[%s1960_s0 + $0x198] sm:$0xff]  ;;  %v54_v41 = vld [vmem:[%s1960_s0 + $0x140] sm:$0xff] }
   0xe   :  { %v40_v36 = vld [vmem:[%s1960_s0 + $0xd0] sm:$0xff]  ;;  %v25_v39 = vld [vmem:[%s1960_s0 + $0x58] sm:$0xff]  ;;  %v66_v42 = vld [vmem:[%s1960_s0 + $0x1a0] sm:$0xff] }
   0xf   :  { %v41_v40 = vld [vmem:[%s1960_s0 + $0xd8] sm:$0xff]  ;;  %v26_v43 = vld [vmem:[%s1960_s0 + $0x60] sm:$0xff]  ;;  %v55_v45 = vld [vmem:[%s1960_s0 + $0x148] sm:$0xff] }
  0x10   :  { %v42_v44 = vld [vmem:[%s1960_s0 + $0xe0] sm:$0xff]  ;;  %v67_v46 = vld [vmem:[%s1960_s0 + $0x1a8] sm:$0xff]  ;;  %v56_v49 = vld [vmem:[%s1960_s0 + $0x150] sm:$0xff] }
  0x11   :  { %v27_v47 = vld [vmem:[%s1960_s0 + $0x68] sm:$0xff]  ;;  %v68_v50 = vld [vmem:[%s1960_s0 + $0x1b0] sm:$0xff]  ;;  %v57_v53 = vld [vmem:[%s1960_s0 + $0x158] sm:$0xff] }
  0x12   :  { %v43_v48 = vld [vmem:[%s1960_s0 + $0xe8] sm:$0xff]  ;;  %v28_v51 = vld [vmem:[%s1960_s0 + $0x70] sm:$0xff]  ;;  %v69_v54 = vld [vmem:[%s1960_s0 + $0x1b8] sm:$0xff] }
  0x13   :  { %901 = vmatmul.msk.f32.gmra.mxu0 %vm83_vm1, %v15_v7  ;;  %917 = vmatmul.msk.f32.gmra.mxu1 %vm83_vm1, %v31_v8  ;;  %v44_v52 = vld [vmem:[%s1960_s0 + $0xf0] sm:$0xff]  ;;  %v29_v55 = vld [vmem:[%s1960_s0 + $0x78] sm:$0xff]  ;;  %v58_v57 = vld [vmem:[%s1960_s0 + $0x160] sm:$0xff] }
  0x14   :  { %v45_v56 = vld [vmem:[%s1960_s0 + $0xf8] sm:$0xff]  ;;  %v70_v58 = vld [vmem:[%s1960_s0 + $0x1c0] sm:$0xff]  ;;  %v59_v61 = vld [vmem:[%s1960_s0 + $0x168] sm:$0xff] }
  0x15   :  { %933 = vmatmul.msk.f32.gmra.mxu2 %vm83_vm1, %v47_v16  ;;  %949 = vmatmul.msk.f32.gmra.mxu3 %vm83_vm1, %v63_v30  ;;  %v71_v62 = vld [vmem:[%s1960_s0 + $0x1c8] sm:$0xff] }
  0x1b   :  { %902 = vmatmul.msk.f32.gmra.mxu0 %vm83_vm1, %v16_v9  ;;  %918 = vmatmul.msk.f32.gmra.mxu1 %vm83_vm1, %v32_v10  ;;  %v60_v9 = vld [vmem:[%s1960_s0 + $0x170] sm:$0xff] }
  0x1c   :  { %v72_v10 = vld [vmem:[%s1960_s0 + $0x1d0] sm:$0xff] }
  0x1d   :  { %934 = vmatmul.msk.f32.gmra.mxu2 %vm83_vm1, %v48_v19  ;;  %950 = vmatmul.msk.f32.gmra.mxu3 %vm83_vm1, %v64_v34  ;;  %v73_v19 = vld [vmem:[%s1960_s0 + $0x1d8] sm:$0xff] }
  0x23   :  { %903 = vmatmul.msk.f32.gmra.mxu0 %vm83_vm1, %v17_v11  ;;  %919 = vmatmul.msk.f32.gmra.mxu1 %vm83_vm1, %v33_v12 }
  0x25   :  { %935 = vmatmul.msk.f32.gmra.mxu2 %vm83_vm1, %v49_v22  ;;  %951 = vmatmul.msk.f32.gmra.mxu3 %vm83_vm1, %v65_v38 }
  0x2b   :  { %904 = vmatmul.msk.f32.gmra.mxu0 %vm83_vm1, %v18_v14  ;;  %920 = vmatmul.msk.f32.gmra.mxu1 %vm83_vm1, %v34_v15 }
  0x2d   :  { %936 = vmatmul.msk.f32.gmra.mxu2 %vm83_vm1, %v50_v25  ;;  %952 = vmatmul.msk.f32.gmra.mxu3 %vm83_vm1, %v66_v42 }
  0x33   :  { %905 = vmatmul.msk.f32.gmra.mxu0 %vm83_vm1, %v19_v17  ;;  %921 = vmatmul.msk.f32.gmra.mxu1 %vm83_vm1, %v35_v18  ;;  %v61_v18 = vld [vmem:[%s1960_s0 + $0x178] sm:$0xff] }
  0x35   :  { %937 = vmatmul.msk.f32.gmra.mxu2 %vm83_vm1, %v51_v29  ;;  %953 = vmatmul.msk.f32.gmra.mxu3 %vm83_vm1, %v67_v46 }
  0x3b   :  { %906 = vmatmul.msk.f32.gmra.mxu0 %vm83_vm1, %v20_v20  ;;  %922 = vmatmul.msk.f32.gmra.mxu1 %vm83_vm1, %v36_v21 }
  0x3d   :  { %938 = vmatmul.msk.f32.gmra.mxu2 %vm83_vm1, %v52_v33  ;;  %954 = vmatmul.msk.f32.gmra.mxu3 %vm83_vm1, %v68_v50 }
  0x43   :  { %907 = vmatmul.msk.f32.gmra.mxu0 %vm83_vm1, %v21_v23  ;;  %923 = vmatmul.msk.f32.gmra.mxu1 %vm83_vm1, %v37_v24 }
  0x45   :  { %939 = vmatmul.msk.f32.gmra.mxu2 %vm83_vm1, %v53_v37  ;;  %955 = vmatmul.msk.f32.gmra.mxu3 %vm83_vm1, %v69_v54 }
  0x4b   :  { %908 = vmatmul.msk.f32.gmra.mxu0 %vm83_vm1, %v22_v27  ;;  %924 = vmatmul.msk.f32.gmra.mxu1 %vm83_vm1, %v38_v28  ;;  %v74_v27 = vld [vmem:[%s1960_s0 + $0x1e0] sm:$0xff] }
  0x4d   :  { %940 = vmatmul.msk.f32.gmra.mxu2 %vm83_vm1, %v54_v41  ;;  %956 = vmatmul.msk.f32.gmra.mxu3 %vm83_vm1, %v70_v58 }
  0x53   :  { %909 = vmatmul.msk.f32.gmra.mxu0 %vm83_vm1, %v23_v31  ;;  %925 = vmatmul.msk.f32.gmra.mxu1 %vm83_vm1, %v39_v32 }
  0x55   :  { %941 = vmatmul.msk.f32.gmra.mxu2 %vm83_vm1, %v55_v45  ;;  %957 = vmatmul.msk.f32.gmra.mxu3 %vm83_vm1, %v71_v62 }
  0x5b   :  { %910 = vmatmul.msk.f32.gmra.mxu0 %vm83_vm1, %v24_v35  ;;  %926 = vmatmul.msk.f32.gmra.mxu1 %vm83_vm1, %v40_v36  ;;  %v75_v36 = vld [vmem:[%s1960_s0 + $0x1e8] sm:$0xff] }
  0x5d   :  { %942 = vmatmul.msk.f32.gmra.mxu2 %vm83_vm1, %v56_v49  ;;  %958 = vmatmul.msk.f32.gmra.mxu3 %vm83_vm1, %v72_v10 }
  0x63   :  { %911 = vmatmul.msk.f32.gmra.mxu0 %vm83_vm1, %v25_v39  ;;  %927 = vmatmul.msk.f32.gmra.mxu1 %vm83_vm1, %v41_v40  ;;  %v76_v40 = vld [vmem:[%s1960_s0 + $0x1f0] sm:$0xff] }
  0x65   :  { %943 = vmatmul.msk.f32.gmra.mxu2 %vm83_vm1, %v57_v53  ;;  %959 = vmatmul.msk.f32.gmra.mxu3 %vm83_vm1, %v73_v19 }
  0x6b   :  { %912 = vmatmul.msk.f32.gmra.mxu0 %vm83_vm1, %v26_v43  ;;  %928 = vmatmul.msk.f32.gmra.mxu1 %vm83_vm1, %v42_v44  ;;  %v77_v44 = vld [vmem:[%s1960_s0 + $0x1f8] sm:$0xff] }
  0x6d   :  { %944 = vmatmul.msk.f32.gmra.mxu2 %vm83_vm1, %v58_v57  ;;  %960 = vmatmul.msk.f32.gmra.mxu3 %vm83_vm1, %v74_v27 }
  0x73   :  { %913 = vmatmul.msk.f32.gmra.mxu0 %vm83_vm1, %v27_v47  ;;  %929 = vmatmul.msk.f32.gmra.mxu1 %vm83_vm1, %v43_v48 }
  0x75   :  { %945 = vmatmul.msk.f32.gmra.mxu2 %vm83_vm1, %v59_v61  ;;  %961 = vmatmul.msk.f32.gmra.mxu3 %vm83_vm1, %v75_v36 }
  0x7b   :  { %914 = vmatmul.msk.f32.gmra.mxu0 %vm83_vm1, %v28_v51  ;;  %930 = vmatmul.msk.f32.gmra.mxu1 %vm83_vm1, %v44_v52 }
  0x7d   :  { %946 = vmatmul.msk.f32.gmra.mxu2 %vm83_vm1, %v60_v9  ;;  %962 = vmatmul.msk.f32.gmra.mxu3 %vm83_vm1, %v76_v40 }
  0x83   :  { %915 = vmatmul.msk.f32.gmra.mxu0 %vm83_vm1, %v29_v55  ;;  %931 = vmatmul.msk.f32.gmra.mxu1 %vm83_vm1, %v45_v56 }
  0x85   :  { %947 = vmatmul.msk.f32.gmra.mxu2 %vm83_vm1, %v61_v18  ;;  %963 = vmatmul.msk.f32.gmra.mxu3 %vm83_vm1, %v77_v44 }
  0x88   :  { %v297_v59 = vpop.f32.mrf.mxu0  ;;  %v1235_v60 = vpop.f32.mrf.mxu1 }
  0x89   :  { %490 = vst.msk [vmem:[%s1961_s2] sm:$0xff] %vm489_vm2, %v297_v59  ;;  %v689_v63 = vmul.f32 %v297_v59, %v297_v59  ;;  %v554_v2 = vsel %vm489_vm2, %v297_v59, 0.0 }
  0x8a   :  { %506 = vst.msk [vmem:[%s1961_s2 + $0x80] sm:$0xff] %vm489_vm2, %v1235_v60 }
  0x8b   :  { %v753_v6 = vsel %vm489_vm2, %v689_v63, 0.0 }
  0x90   :  { %v300_v0 = vpop.f32.mrf.mxu0  ;;  %v1254_v1 = vpop.f32.mrf.mxu1 }
  0x91   :  { %491 = vst.msk [vmem:[%s1961_s2 + $0x8] sm:$0xff] %vm489_vm2, %v300_v0  ;;  %v555_v3 = vsel %vm489_vm2, %v300_v0, 0.0  ;;  %v690_v4 = vmul.f32 %v300_v0, %v300_v0  ;;  %v1322_v32 = vpop.f32.mrf.mxu2  ;;  %v1413_v51 = vpop.f32.mrf.mxu3 }
  0x92   :  { %v556_v5 = vadd.f32 %v555_v3, %v554_v2  ;;  %507 = vst.msk [vmem:[%s1961_s2 + $0x88] sm:$0xff] %vm489_vm2, %v1254_v1 }
  0x93   :  { %v754_v7 = vsel %vm489_vm2, %v690_v4, 0.0  ;;  %522 = vst.msk [vmem:[%s1961_s2 + $0x100] sm:$0xff] %vm489_vm2, %v1322_v32 }
  0x94   :  { %v755_v8 = vadd.f32 %v754_v7, %v753_v6  ;;  %538 = vst.msk [vmem:[%s1961_s2 + $0x180] sm:$0xff] %vm489_vm2, %v1413_v51 }
  0x98   :  { %v303_v11 = vpop.f32.mrf.mxu0  ;;  %v1277_v12 = vpop.f32.mrf.mxu1 }
  0x99   :  { %492 = vst.msk [vmem:[%s1961_s2 + $0x10] sm:$0xff] %vm489_vm2, %v303_v11  ;;  %v557_v13 = vsel %vm489_vm2, %v303_v11, 0.0  ;;  %v691_v14 = vmul.f32 %v303_v11, %v303_v11  ;;  %v1349_v39 = vpop.f32.mrf.mxu2  ;;  %v1438_v55 = vpop.f32.mrf.mxu3 }
  0x9a   :  { %v558_v15 = vadd.f32 %v557_v13, %v556_v5  ;;  %508 = vst.msk [vmem:[%s1961_s2 + $0x90] sm:$0xff] %vm489_vm2, %v1277_v12 }
  0x9b   :  { %v756_v16 = vsel %vm489_vm2, %v691_v14, 0.0  ;;  %523 = vst.msk [vmem:[%s1961_s2 + $0x108] sm:$0xff] %vm489_vm2, %v1349_v39 }
  0x9c   :  { %v757_v17 = vadd.f32 %v756_v16, %v755_v8  ;;  %539 = vst.msk [vmem:[%s1961_s2 + $0x188] sm:$0xff] %vm489_vm2, %v1438_v55 }
  0xa0   :  { %v306_v20 = vpop.f32.mrf.mxu0  ;;  %v1298_v21 = vpop.f32.mrf.mxu1 }
  0xa1   :  { %493 = vst.msk [vmem:[%s1961_s2 + $0x18] sm:$0xff] %vm489_vm2, %v306_v20  ;;  %v559_v22 = vsel %vm489_vm2, %v306_v20, 0.0  ;;  %v692_v23 = vmul.f32 %v306_v20, %v306_v20  ;;  %v1371_v43 = vpop.f32.mrf.mxu2  ;;  %v1463_v59 = vpop.f32.mrf.mxu3 }
  0xa2   :  { %v560_v24 = vadd.f32 %v559_v22, %v558_v15  ;;  %509 = vst.msk [vmem:[%s1961_s2 + $0x98] sm:$0xff] %vm489_vm2, %v1298_v21 }
  0xa3   :  { %v758_v25 = vsel %vm489_vm2, %v692_v23, 0.0  ;;  %524 = vst.msk [vmem:[%s1961_s2 + $0x110] sm:$0xff] %vm489_vm2, %v1371_v43 }
  0xa4   :  { %v759_v26 = vadd.f32 %v758_v25, %v757_v17  ;;  %540 = vst.msk [vmem:[%s1961_s2 + $0x190] sm:$0xff] %vm489_vm2, %v1463_v59 }
  0xa8   :  { %v309_v28 = vpop.f32.mrf.mxu0  ;;  %v1315_v29 = vpop.f32.mrf.mxu1 }
  0xa9   :  { %494 = vst.msk [vmem:[%s1961_s2 + $0x20] sm:$0xff] %vm489_vm2, %v309_v28  ;;  %v561_v30 = vsel %vm489_vm2, %v309_v28, 0.0  ;;  %v693_v31 = vmul.f32 %v309_v28, %v309_v28  ;;  %v1393_v47 = vpop.f32.mrf.mxu2  ;;  %v1488_v0 = vpop.f32.mrf.mxu3 }
  0xaa   :  { %v1324_v33 = vadd.f32 %v561_v30, %v560_v24  ;;  %510 = vst.msk [vmem:[%s1961_s2 + $0xa0] sm:$0xff] %vm489_vm2, %v1315_v29 }
  0xab   :  { %v760_v34 = vsel %vm489_vm2, %v693_v31, 0.0  ;;  %525 = vst.msk [vmem:[%s1961_s2 + $0x118] sm:$0xff] %vm489_vm2, %v1393_v47 }
  0xac   :  { %v1337_v35 = vadd.f32 %v760_v34, %v759_v26  ;;  %541 = vst.msk [vmem:[%s1961_s2 + $0x198] sm:$0xff] %vm489_vm2, %v1488_v0 }
  0xb0   :  { %v312_v37 = vpop.f32.mrf.mxu0  ;;  %v1343_v38 = vpop.f32.mrf.mxu1 }
  0xb1   :  { %495 = vst.msk [vmem:[%s1961_s2 + $0x28] sm:$0xff] %vm489_vm2, %v312_v37  ;;  %v1411_v50 = vpop.f32.mrf.mxu2  ;;  %v694_v4 = vmul.f32 %v312_v37, %v312_v37  ;;  %v1513_v6 = vpop.f32.mrf.mxu3  ;;  %v563_v7 = vsel %vm489_vm2, %v312_v37, 0.0 }
  0xb2   :  { %511 = vst.msk [vmem:[%s1961_s2 + $0xa8] sm:$0xff] %vm489_vm2, %v1343_v38  ;;  %v564_v13 = vadd.f32 %v563_v7, %v1324_v33 }
  0xb3   :  { %526 = vst.msk [vmem:[%s1961_s2 + $0x120] sm:$0xff] %vm489_vm2, %v1411_v50  ;;  %v762_v9 = vsel %vm489_vm2, %v694_v4, 0.0 }
  0xb4   :  { %542 = vst.msk [vmem:[%s1961_s2 + $0x1a0] sm:$0xff] %vm489_vm2, %v1513_v6  ;;  %v763_v17 = vadd.f32 %v762_v9, %v1337_v35 }
  0xb8   :  { %v315_v41 = vpop.f32.mrf.mxu0  ;;  %v1365_v42 = vpop.f32.mrf.mxu1 }
  0xb9   :  { %496 = vst.msk [vmem:[%s1961_s2 + $0x30] sm:$0xff] %vm489_vm2, %v315_v41  ;;  %v1436_v54 = vpop.f32.mrf.mxu2  ;;  %v695_v8 = vmul.f32 %v315_v41, %v315_v41  ;;  %v565_v10 = vsel %vm489_vm2, %v315_v41, 0.0  ;;  %v1547_v26 = vpop.f32.mrf.mxu3 }
  0xba   :  { %512 = vst.msk [vmem:[%s1961_s2 + $0xb0] sm:$0xff] %vm489_vm2, %v1365_v42  ;;  %v566_v18 = vadd.f32 %v565_v10, %v564_v13 }
  0xbb   :  { %527 = vst.msk [vmem:[%s1961_s2 + $0x128] sm:$0xff] %vm489_vm2, %v1436_v54  ;;  %v764_v14 = vsel %vm489_vm2, %v695_v8, 0.0 }
  0xbc   :  { %v765_v27 = vadd.f32 %v764_v14, %v763_v17  ;;  %543 = vst.msk [vmem:[%s1961_s2 + $0x1a8] sm:$0xff] %vm489_vm2, %v1547_v26 }
  0xc0   :  { %v318_v45 = vpop.f32.mrf.mxu0  ;;  %v1387_v46 = vpop.f32.mrf.mxu1 }
  0xc1   :  { %497 = vst.msk [vmem:[%s1961_s2 + $0x38] sm:$0xff] %vm489_vm2, %v318_v45  ;;  %v1461_v58 = vpop.f32.mrf.mxu2  ;;  %v696_v11 = vmul.f32 %v318_v45, %v318_v45  ;;  %v567_v15 = vsel %vm489_vm2, %v318_v45, 0.0  ;;  %v1580_v14 = vpop.f32.mrf.mxu3 }
  0xc2   :  { %513 = vst.msk [vmem:[%s1961_s2 + $0xb8] sm:$0xff] %vm489_vm2, %v1387_v46  ;;  %v568_v28 = vadd.f32 %v567_v15, %v566_v18 }
  0xc3   :  { %528 = vst.msk [vmem:[%s1961_s2 + $0x130] sm:$0xff] %vm489_vm2, %v1461_v58  ;;  %v766_v22 = vsel %vm489_vm2, %v696_v11, 0.0 }
  0xc4   :  { %v767_v34 = vadd.f32 %v766_v22, %v765_v27  ;;  %544 = vst.msk [vmem:[%s1961_s2 + $0x1b0] sm:$0xff] %vm489_vm2, %v1580_v14 }
  0xc8   :  { %v321_v48 = vpop.f32.mrf.mxu0  ;;  %v1405_v49 = vpop.f32.mrf.mxu1 }
  0xc9   :  { %498 = vst.msk [vmem:[%s1961_s2 + $0x40] sm:$0xff] %vm489_vm2, %v321_v48  ;;  %v1486_v63 = vpop.f32.mrf.mxu2  ;;  %v697_v16 = vmul.f32 %v321_v48, %v321_v48  ;;  %v569_v23 = vsel %vm489_vm2, %v321_v48, 0.0 }
  0xca   :  { %514 = vst.msk [vmem:[%s1961_s2 + $0xc0] sm:$0xff] %vm489_vm2, %v1405_v49  ;;  %v570_v35 = vadd.f32 %v569_v23, %v568_v28 }
  0xcb   :  { %529 = vst.msk [vmem:[%s1961_s2 + $0x138] sm:$0xff] %vm489_vm2, %v1486_v63  ;;  %v768_v30 = vsel %vm489_vm2, %v697_v16, 0.0 }
  0xcc   :  { %v769_v41 = vadd.f32 %v768_v30, %v767_v34 }
  0xd0   :  { %v324_v52 = vpop.f32.mrf.mxu0  ;;  %v1430_v53 = vpop.f32.mrf.mxu1 }
  0xd1   :  { %499 = vst.msk [vmem:[%s1961_s2 + $0x48] sm:$0xff] %vm489_vm2, %v324_v52  ;;  %v1511_v5 = vpop.f32.mrf.mxu2  ;;  %v698_v24 = vmul.f32 %v324_v52, %v324_v52  ;;  %v571_v31 = vsel %vm489_vm2, %v324_v52, 0.0 }
  0xd2   :  { %515 = vst.msk [vmem:[%s1961_s2 + $0xc8] sm:$0xff] %vm489_vm2, %v1430_v53  ;;  %v572_v44 = vadd.f32 %v571_v31, %v570_v35  ;;  %v705_v35 = vmul.f32 %v1235_v60, %v1235_v60 }
  0xd3   :  { %530 = vst.msk [vmem:[%s1961_s2 + $0x140] sm:$0xff] %vm489_vm2, %v1511_v5  ;;  %v770_v36 = vsel %vm489_vm2, %v698_v24, 0.0 }
  0xd4   :  { %v771_v4 = vadd.f32 %v770_v36, %v769_v41  ;;  %v1613_v41 = vpop.f32.mrf.mxu3 }
  0xd5   :  { %545 = vst.msk [vmem:[%s1961_s2 + $0x1b8] sm:$0xff] %vm489_vm2, %v1613_v41 }
  0xd8   :  { %v327_v56 = vpop.f32.mrf.mxu0  ;;  %v1455_v57 = vpop.f32.mrf.mxu1 }
  0xd9   :  { %500 = vst.msk [vmem:[%s1961_s2 + $0x50] sm:$0xff] %vm489_vm2, %v327_v56  ;;  %v1545_v25 = vpop.f32.mrf.mxu2  ;;  %v699_v33 = vmul.f32 %v327_v56, %v327_v56  ;;  %v573_v37 = vsel %vm489_vm2, %v327_v56, 0.0 }
  0xda   :  { %516 = vst.msk [vmem:[%s1961_s2 + $0xd0] sm:$0xff] %vm489_vm2, %v1455_v57  ;;  %v574_v7 = vadd.f32 %v573_v37, %v572_v44 }
  0xdb   :  { %531 = vst.msk [vmem:[%s1961_s2 + $0x148] sm:$0xff] %vm489_vm2, %v1545_v25  ;;  %v772_v45 = vsel %vm489_vm2, %v699_v33, 0.0 }
  0xe0   :  { %v330_v61 = vpop.f32.mrf.mxu0  ;;  %v1480_v62 = vpop.f32.mrf.mxu1 }
  0xe1   :  { %501 = vst.msk [vmem:[%s1961_s2 + $0x58] sm:$0xff] %vm489_vm2, %v330_v61  ;;  %v700_v40 = vmul.f32 %v330_v61, %v330_v61  ;;  %v575_v48 = vsel %vm489_vm2, %v330_v61, 0.0  ;;  %v1578_v56 = vpop.f32.mrf.mxu2  ;;  %v773_v61 = vadd.f32 %v772_v45, %v771_v4 }
  0xe2   :  { %517 = vst.msk [vmem:[%s1961_s2 + $0xd8] sm:$0xff] %vm489_vm2, %v1480_v62  ;;  %v576_v15 = vadd.f32 %v575_v48, %v574_v7  ;;  %v585_v48 = vsel %vm489_vm2, %v1235_v60, 0.0  ;;  %v784_v60 = vsel %vm489_vm2, %v705_v35, 0.0 }
  0xe3   :  { %v774_v10 = vsel %vm489_vm2, %v700_v40, 0.0  ;;  %532 = vst.msk [vmem:[%s1961_s2 + $0x150] sm:$0xff] %vm489_vm2, %v1578_v56 }
  0xe4   :  { %v775_v18 = vadd.f32 %v774_v10, %v773_v61  ;;  %v587_v10 = vsel %vm489_vm2, %v1254_v1, 0.0 }
  0xe8   :  { %v333_v2 = vpop.f32.mrf.mxu0  ;;  %v1505_v3 = vpop.f32.mrf.mxu1 }
  0xe9   :  { %502 = vst.msk [vmem:[%s1961_s2 + $0x60] sm:$0xff] %vm489_vm2, %v333_v2  ;;  %v701_v52 = vmul.f32 %v333_v2, %v333_v2  ;;  %v577_v11 = vsel %vm489_vm2, %v333_v2, 0.0  ;;  %v1611_v40 = vpop.f32.mrf.mxu2 }
  0xea   :  { %518 = vst.msk [vmem:[%s1961_s2 + $0xe0] sm:$0xff] %vm489_vm2, %v1505_v3  ;;  %v578_v22 = vadd.f32 %v577_v11, %v576_v15  ;;  %v707_v11 = vmul.f32 %v1277_v12, %v1277_v12 }
  0xeb   :  { %v776_v2 = vsel %vm489_vm2, %v701_v52, 0.0  ;;  %v706_v52 = vmul.f32 %v1254_v1, %v1254_v1  ;;  %533 = vst.msk [vmem:[%s1961_s2 + $0x158] sm:$0xff] %vm489_vm2, %v1611_v40  ;;  %v591_v1 = vsel %vm489_vm2, %v1298_v21, 0.0 }
  0xed   :  { %v786_v15 = vsel %vm489_vm2, %v706_v52, 0.0  ;;  %v712_v52 = vmul.f32 %v1387_v46, %v1387_v46 }
  0xf0   :  { %v336_v19 = vpop.f32.mrf.mxu0  ;;  %v1537_v20 = vpop.f32.mrf.mxu1 }
  0xf1   :  { %503 = vst.msk [vmem:[%s1961_s2 + $0x68] sm:$0xff] %vm489_vm2, %v336_v19  ;;  %v702_v13 = vmul.f32 %v336_v19, %v336_v19  ;;  %v579_v16 = vsel %vm489_vm2, %v336_v19, 0.0  ;;  %v777_v19 = vadd.f32 %v776_v2, %v775_v18  ;;  %v589_v2 = vsel %vm489_vm2, %v1277_v12, 0.0 }
  0xf2   :  { %519 = vst.msk [vmem:[%s1961_s2 + $0xe8] sm:$0xff] %vm489_vm2, %v1537_v20  ;;  %v580_v27 = vadd.f32 %v579_v16, %v578_v22  ;;  %v708_v16 = vmul.f32 %v1298_v21, %v1298_v21  ;;  %v788_v22 = vsel %vm489_vm2, %v707_v11, 0.0  ;;  %v593_v21 = vsel %vm489_vm2, %v1315_v29, 0.0 }
  0xf3   :  { %v778_v23 = vsel %vm489_vm2, %v702_v13, 0.0 }
  0xf4   :  { %v779_v30 = vadd.f32 %v778_v23, %v777_v19  ;;  %v709_v23 = vmul.f32 %v1315_v29, %v1315_v29  ;;  %v1652_v19 = vpop.f32.mrf.mxu3  ;;  %v790_v12 = vsel %vm489_vm2, %v708_v16, 0.0 }
  0xf5   :  { %546 = vst.msk [vmem:[%s1961_s2 + $0x1c0] sm:$0xff] %vm489_vm2, %v1652_v19 }
  0xf6   :  { %v792_v35 = vsel %vm489_vm2, %v709_v23, 0.0 }
  0xf8   :  { %v339_v8 = vpop.f32.mrf.mxu0  ;;  %v1570_v9 = vpop.f32.mrf.mxu1 }
  0xf9   :  { %504 = vst.msk [vmem:[%s1961_s2 + $0x70] sm:$0xff] %vm489_vm2, %v339_v8  ;;  %v703_v17 = vmul.f32 %v339_v8, %v339_v8  ;;  %v581_v24 = vsel %vm489_vm2, %v339_v8, 0.0 }
  0xfa   :  { %520 = vst.msk [vmem:[%s1961_s2 + $0xf0] sm:$0xff] %vm489_vm2, %v1570_v9  ;;  %v582_v31 = vadd.f32 %v581_v24, %v580_v27  ;;  %v1650_v24 = vpop.f32.mrf.mxu2 }
  0xfb   :  { %v780_v28 = vsel %vm489_vm2, %v703_v17, 0.0  ;;  %534 = vst.msk [vmem:[%s1961_s2 + $0x160] sm:$0xff] %vm489_vm2, %v1650_v24 }
  0xfc   :  { %v781_v44 = vadd.f32 %v780_v28, %v779_v30  ;;  %v710_v30 = vmul.f32 %v1343_v38, %v1343_v38  ;;  %v1686_v11 = vpop.f32.mrf.mxu3 }
  0xfd   :  { %547 = vst.msk [vmem:[%s1961_s2 + $0x1c8] sm:$0xff] %vm489_vm2, %v1686_v11 }
 0x100   :  { %v342_v33 = vpop.f32.mrf.mxu0  ;;  %v1602_v34 = vpop.f32.mrf.mxu1 }
 0x101   :  { %505 = vst.msk [vmem:[%s1961_s2 + $0x78] sm:$0xff] %vm489_vm2, %v342_v33  ;;  %v583_v36 = vsel %vm489_vm2, %v342_v33, 0.0  ;;  %v704_v37 = vmul.f32 %v342_v33, %v342_v33 }
 0x102   :  { %v584_v45 = vadd.f32 %v583_v36, %v582_v31  ;;  %521 = vst.msk [vmem:[%s1961_s2 + $0xf8] sm:$0xff] %vm489_vm2, %v1602_v34  ;;  %v595_v36 = vsel %vm489_vm2, %v1343_v38, 0.0  ;;  %v599_v38 = vsel %vm489_vm2, %v1387_v46, 0.0  ;;  %v601_v46 = vsel %vm489_vm2, %v1405_v49, 0.0 }
 0x103   :  { %v782_v4 = vsel %vm489_vm2, %v704_v37, 0.0  ;;  %v711_v37 = vmul.f32 %v1365_v42, %v1365_v42 }
 0x104   :  { %v586_v7 = vadd.f32 %v585_v48, %v584_v45  ;;  %v783_v8 = vadd.f32 %v782_v4, %v781_v44  ;;  %v794_v45 = vsel %vm489_vm2, %v710_v30, 0.0  ;;  %v597_v48 = vsel %vm489_vm2, %v1365_v42, 0.0 }
 0x105   :  { %v798_v42 = vsel %vm489_vm2, %v712_v52, 0.0  ;;  %v611_v52 = vsel %vm489_vm2, %v1537_v20, 0.0 }
 0x106   :  { %v588_v13 = vadd.f32 %v587_v10, %v586_v7  ;;  %v785_v61 = vadd.f32 %v784_v60, %v783_v8  ;;  %v796_v8 = vsel %vm489_vm2, %v711_v37, 0.0  ;;  %v713_v60 = vmul.f32 %v1405_v49, %v1405_v49  ;;  %v1684_v10 = vpop.f32.mrf.mxu2 }
 0x107   :  { %535 = vst.msk [vmem:[%s1961_s2 + $0x168] sm:$0xff] %vm489_vm2, %v1684_v10 }
 0x108   :  { %v590_v17 = vadd.f32 %v589_v2, %v588_v13  ;;  %v787_v18 = vadd.f32 %v786_v15, %v785_v61  ;;  %v714_v15 = vmul.f32 %v1430_v53, %v1430_v53 }
 0x10a   :  { %v592_v27 = vadd.f32 %v591_v1, %v590_v17  ;;  %v789_v28 = vadd.f32 %v788_v22, %v787_v18  ;;  %v800_v17 = vsel %vm489_vm2, %v713_v60, 0.0  ;;  %v603_v18 = vsel %vm489_vm2, %v1430_v53, 0.0 }
 0x10b   :  { %v715_v22 = vmul.f32 %v1455_v57, %v1455_v57  ;;  %v802_v23 = vsel %vm489_vm2, %v714_v15, 0.0  ;;  %v607_v53 = vsel %vm489_vm2, %v1480_v62, 0.0  ;;  %v613_v60 = vsel %vm489_vm2, %v1570_v9, 0.0 }
 0x10c   :  { %v594_v31 = vadd.f32 %v593_v21, %v592_v27  ;;  %v791_v33 = vadd.f32 %v790_v12, %v789_v28  ;;  %v605_v27 = vsel %vm489_vm2, %v1455_v57, 0.0  ;;  %v716_v28 = vmul.f32 %v1480_v62, %v1480_v62 }
 0x10d   :  { %v804_v30 = vsel %vm489_vm2, %v715_v22, 0.0  ;;  %v609_v62 = vsel %vm489_vm2, %v1505_v3, 0.0 }
 0x10e   :  { %v596_v29 = vadd.f32 %v595_v36, %v594_v31  ;;  %v793_v44 = vadd.f32 %v792_v35, %v791_v33  ;;  %v717_v31 = vmul.f32 %v1505_v3, %v1505_v3  ;;  %v1718_v33 = vpop.f32.mrf.mxu2  ;;  %v1720_v35 = vpop.f32.mrf.mxu3  ;;  %v806_v57 = vsel %vm489_vm2, %v716_v28, 0.0 }
 0x10f   :  { %536 = vst.msk [vmem:[%s1961_s2 + $0x170] sm:$0xff] %vm489_vm2, %v1718_v33  ;;  %v720_v3 = vmul.f32 %v1602_v34, %v1602_v34 }
 0x110   :  { %v795_v4 = vadd.f32 %v794_v45, %v793_v44  ;;  %v598_v7 = vadd.f32 %v597_v48, %v596_v29  ;;  %v718_v29 = vmul.f32 %v1537_v20, %v1537_v20  ;;  %548 = vst.msk [vmem:[%s1961_s2 + $0x1d0] sm:$0xff] %vm489_vm2, %v1720_v35  ;;  %v808_v48 = vsel %vm489_vm2, %v717_v31, 0.0 }
 0x111   :  { %v721_v20 = vmul.f32 %v1322_v32, %v1322_v32  ;;  %v814_v15 = vsel %vm489_vm2, %v720_v3, 0.0  ;;  %v727_v3 = vmul.f32 %v1461_v58, %v1461_v58 }
 0x112   :  { %v600_v13 = vadd.f32 %v599_v38, %v598_v7  ;;  %v797_v61 = vadd.f32 %v796_v8, %v795_v4  ;;  %v719_v4 = vmul.f32 %v1570_v9, %v1570_v9  ;;  %v810_v38 = vsel %vm489_vm2, %v718_v29, 0.0 }
 0x113   :  { %v617_v9 = vsel %vm489_vm2, %v1322_v32, 0.0 }
 0x114   :  { %v602_v2 = vadd.f32 %v601_v46, %v600_v13  ;;  %v799_v16 = vadd.f32 %v798_v42, %v797_v61  ;;  %v615_v13 = vsel %vm489_vm2, %v1602_v34, 0.0  ;;  %v812_v46 = vsel %vm489_vm2, %v719_v4, 0.0 }
 0x115   :  { %v722_v34 = vmul.f32 %v1349_v39, %v1349_v39  ;;  %v627_v4 = vsel %vm489_vm2, %v1436_v54, 0.0 }
 0x116   :  { %v604_v49 = vadd.f32 %v603_v18, %v602_v2  ;;  %v801_v1 = vadd.f32 %v800_v17, %v799_v16  ;;  %v1753_v2 = vpop.f32.mrf.mxu2  ;;  %v1755_v16 = vpop.f32.mrf.mxu3 }
 0x117   :  { %537 = vst.msk [vmem:[%s1961_s2 + $0x178] sm:$0xff] %vm489_vm2, %v1753_v2 }
 0x118   :  { %v606_v12 = vadd.f32 %v605_v27, %v604_v49  ;;  %v803_v21 = vadd.f32 %v802_v23, %v801_v1  ;;  %549 = vst.msk [vmem:[%s1961_s2 + $0x1d8] sm:$0xff] %vm489_vm2, %v1755_v16  ;;  %v816_v1 = vsel %vm489_vm2, %v721_v20, 0.0  ;;  %v619_v23 = vsel %vm489_vm2, %v1349_v39, 0.0 }
 0x119   :  { %v723_v27 = vmul.f32 %v1371_v43, %v1371_v43  ;;  %v623_v39 = vsel %vm489_vm2, %v1393_v47, 0.0  ;;  %v729_v20 = vmul.f32 %v1511_v5, %v1511_v5 }
 0x11a   :  { %v608_v36 = vadd.f32 %v607_v53, %v606_v12  ;;  %v805_v37 = vadd.f32 %v804_v30, %v803_v21  ;;  %v818_v12 = vsel %vm489_vm2, %v722_v34, 0.0  ;;  %v621_v21 = vsel %vm489_vm2, %v1371_v43, 0.0 }
 0x11b   :  { %v724_v30 = vmul.f32 %v1393_v47, %v1393_v47  ;;  %v726_v47 = vmul.f32 %v1436_v54, %v1436_v54  ;;  %v631_v54 = vsel %vm489_vm2, %v1486_v63, 0.0 }
 0x11c   :  { %v807_v44 = vadd.f32 %v806_v57, %v805_v37  ;;  %v610_v45 = vadd.f32 %v609_v62, %v608_v36  ;;  %v820_v36 = vsel %vm489_vm2, %v723_v27, 0.0  ;;  %v725_v37 = vmul.f32 %v1411_v50, %v1411_v50 }
 0x11d   :  { %v822_v43 = vsel %vm489_vm2, %v724_v30, 0.0 }
 0x11e   :  { %v809_v7 = vadd.f32 %v808_v48, %v807_v44  ;;  %v612_v8 = vadd.f32 %v611_v52, %v610_v45  ;;  %v1786_v57 = vpop.f32.mrf.mxu3  ;;  %v625_v44 = vsel %vm489_vm2, %v1411_v50, 0.0  ;;  %v824_v52 = vsel %vm489_vm2, %v725_v37, 0.0 }
 0x11f   :  { %550 = vst.msk [vmem:[%s1961_s2 + $0x1e0] sm:$0xff] %vm489_vm2, %v1786_v57  ;;  %v629_v50 = vsel %vm489_vm2, %v1461_v58, 0.0  ;;  %v641_v37 = vsel %vm489_vm2, %v1650_v24, 0.0 }
 0x120   :  { %v811_v61 = vadd.f32 %v810_v38, %v809_v7  ;;  %v614_v42 = vadd.f32 %v613_v60, %v612_v8  ;;  %v826_v38 = vsel %vm489_vm2, %v726_v47, 0.0  ;;  %v728_v60 = vmul.f32 %v1486_v63, %v1486_v63 }
 0x121   :  { %v730_v63 = vmul.f32 %v1545_v25, %v1545_v25  ;;  %v735_v47 = vmul.f32 %v1718_v33, %v1718_v33 }
 0x122   :  { %v813_v17 = vadd.f32 %v812_v46, %v811_v61  ;;  %v616_v18 = vadd.f32 %v615_v13, %v614_v42  ;;  %v828_v42 = vsel %vm489_vm2, %v727_v3, 0.0  ;;  %v830_v58 = vsel %vm489_vm2, %v728_v60, 0.0 }
 0x123   :  { %v647_v3 = vsel %vm489_vm2, %v1753_v2, 0.0 }
 0x124   :  { %v618_v22 = vadd.f32 %v617_v9, %v616_v18  ;;  %v815_v49 = vadd.f32 %v814_v15, %v813_v17  ;;  %v633_v18 = vsel %vm489_vm2, %v1511_v5, 0.0  ;;  %v637_v5 = vsel %vm489_vm2, %v1578_v56, 0.0 }
 0x126   :  { %v620_v32 = vadd.f32 %v619_v23, %v618_v22  ;;  %v817_v28 = vadd.f32 %v816_v1, %v815_v49  ;;  %v1813_v46 = vpop.f32.mrf.mxu3  ;;  %v832_v22 = vsel %vm489_vm2, %v729_v20, 0.0  ;;  %v635_v49 = vsel %vm489_vm2, %v1545_v25, 0.0 }
 0x127   :  { %551 = vst.msk [vmem:[%s1961_s2 + $0x1e8] sm:$0xff] %vm489_vm2, %v1813_v46  ;;  %v731_v1 = vmul.f32 %v1578_v56, %v1578_v56  ;;  %v639_v25 = vsel %vm489_vm2, %v1611_v40, 0.0 }
 0x128   :  { %v622_v53 = vadd.f32 %v621_v21, %v620_v32  ;;  %v819_v31 = vadd.f32 %v818_v12, %v817_v28  ;;  %v834_v32 = vsel %vm489_vm2, %v730_v63, 0.0  ;;  %v732_v28 = vmul.f32 %v1611_v40, %v1611_v40 }
 0x129   :  { %v836_v30 = vsel %vm489_vm2, %v731_v1, 0.0  ;;  %v734_v40 = vmul.f32 %v1684_v10, %v1684_v10  ;;  %v741_v1 = vmul.f32 %v1513_v6, %v1513_v6 }
 0x12a   :  { %v624_v62 = vadd.f32 %v623_v39, %v622_v53  ;;  %v821_v29 = vadd.f32 %v820_v36, %v819_v31  ;;  %v733_v53 = vmul.f32 %v1650_v24, %v1650_v24  ;;  %v838_v56 = vsel %vm489_vm2, %v732_v28, 0.0 }
 0x12b   :  { %v842_v24 = vsel %vm489_vm2, %v734_v40, 0.0 }
 0x12c   :  { %v626_v45 = vadd.f32 %v625_v44, %v624_v62  ;;  %v823_v48 = vadd.f32 %v822_v43, %v821_v29  ;;  %v840_v43 = vsel %vm489_vm2, %v733_v53, 0.0  ;;  %v643_v44 = vsel %vm489_vm2, %v1684_v10, 0.0 }
 0x12d   :  { %v737_v10 = vmul.f32 %v1413_v51, %v1413_v51 }
 0x12e   :  { %v628_v7 = vadd.f32 %v627_v4, %v626_v45  ;;  %v825_v8 = vadd.f32 %v824_v52, %v823_v48  ;;  %v1840_v31 = vpop.f32.mrf.mxu3  ;;  %v736_v45 = vmul.f32 %v1753_v2, %v1753_v2  ;;  %v645_v4 = vsel %vm489_vm2, %v1718_v33, 0.0 }
 0x12f   :  { %552 = vst.msk [vmem:[%s1961_s2 + $0x1f0] sm:$0xff] %vm489_vm2, %v1840_v31  ;;  %v649_v33 = vsel %vm489_vm2, %v1413_v51, 0.0  ;;  %v738_v2 = vmul.f32 %v1438_v55, %v1438_v55  ;;  %v848_v20 = vsel %vm489_vm2, %v737_v10, 0.0  ;;  %v653_v51 = vsel %vm489_vm2, %v1463_v59, 0.0 }
 0x130   :  { %v827_v13 = vadd.f32 %v826_v38, %v825_v8  ;;  %v630_v61 = vadd.f32 %v629_v50, %v628_v7  ;;  %v844_v38 = vsel %vm489_vm2, %v735_v47, 0.0  ;;  %v846_v50 = vsel %vm489_vm2, %v736_v45, 0.0 }
 0x131   :  { %v850_v63 = vsel %vm489_vm2, %v738_v2, 0.0  ;;  %v746_v47 = vmul.f32 %v1686_v11, %v1686_v11 }
 0x132   :  { %v632_v15 = vadd.f32 %v631_v54, %v630_v61  ;;  %v829_v17 = vadd.f32 %v828_v42, %v827_v13 }
 0x134   :  { %v634_v9 = vadd.f32 %v633_v18, %v632_v15  ;;  %v831_v34 = vadd.f32 %v830_v58, %v829_v17  ;;  %v651_v15 = vsel %vm489_vm2, %v1438_v55, 0.0  ;;  %v739_v17 = vmul.f32 %v1463_v59, %v1463_v59 }
 0x135   :  { %v655_v55 = vsel %vm489_vm2, %v1488_v0, 0.0  ;;  %v657_v59 = vsel %vm489_vm2, %v1513_v6, 0.0  ;;  %v661_v6 = vsel %vm489_vm2, %v1580_v14, 0.0 }
 0x136   :  { %v636_v23 = vadd.f32 %v635_v49, %v634_v9  ;;  %v833_v27 = vadd.f32 %v832_v22, %v831_v34  ;;  %v1868_v60 = vpop.f32.mrf.mxu3  ;;  %v740_v9 = vmul.f32 %v1488_v0, %v1488_v0  ;;  %v852_v49 = vsel %vm489_vm2, %v739_v17, 0.0 }
 0x137   :  { %553 = vst.msk [vmem:[%s1961_s2 + $0x1f8] sm:$0xff] %vm489_vm2, %v1868_v60  ;;  %v659_v0 = vsel %vm489_vm2, %v1547_v26, 0.0  ;;  %v751_v17 = vmul.f32 %v1840_v31, %v1840_v31 }
 0x138   :  { %v638_v12 = vadd.f32 %v637_v5, %v636_v23  ;;  %v835_v21 = vadd.f32 %v834_v32, %v833_v27  ;;  %v854_v32 = vsel %vm489_vm2, %v740_v9, 0.0  ;;  %v742_v5 = vmul.f32 %v1547_v26, %v1547_v26 }
 0x139   :  { %v663_v26 = vsel %vm489_vm2, %v1613_v41, 0.0  ;;  %v679_v9 = vsel %vm489_vm2, %v1868_v60, 0.0 }
 0x13a   :  { %v640_v36 = vadd.f32 %v639_v25, %v638_v12  ;;  %v837_v39 = vadd.f32 %v836_v30, %v835_v21  ;;  %v856_v21 = vsel %vm489_vm2, %v741_v1, 0.0  ;;  %v743_v30 = vmul.f32 %v1580_v14, %v1580_v14 }
 0x13b   :  { %v665_v14 = vsel %vm489_vm2, %v1652_v19, 0.0 }
 0x13c   :  { %v839_v62 = vadd.f32 %v838_v56, %v837_v39  ;;  %v642_v29 = vadd.f32 %v641_v37, %v640_v36  ;;  %v858_v36 = vsel %vm489_vm2, %v742_v5, 0.0  ;;  %v744_v39 = vmul.f32 %v1613_v41, %v1613_v41 }
 0x13d   :  { %v860_v40 = vsel %vm489_vm2, %v743_v30, 0.0  ;;  %v667_v41 = vsel %vm489_vm2, %v1686_v11, 0.0  ;;  %v671_v11 = vsel %vm489_vm2, %v1755_v16, 0.0 }
 0x13e   :  { %v841_v48 = vadd.f32 %v840_v43, %v839_v62  ;;  %v644_v52 = vadd.f32 %v643_v44, %v642_v29  ;;  %v745_v62 = vmul.f32 %v1652_v19, %v1652_v19  ;;  %v862_v44 = vsel %vm489_vm2, %v744_v39, 0.0 }
 0x13f   :  { %v669_v19 = vsel %vm489_vm2, %v1720_v35, 0.0 }
 0x140   :  { %v843_v7 = vadd.f32 %v842_v24, %v841_v48  ;;  %v646_v8 = vadd.f32 %v645_v4, %v644_v52  ;;  %v864_v52 = vsel %vm489_vm2, %v745_v62, 0.0  ;;  %v747_v24 = vmul.f32 %v1720_v35, %v1720_v35 }
 0x141   :  { %v673_v35 = vsel %vm489_vm2, %v1786_v57, 0.0 }
 0x142   :  { %v845_v13 = vadd.f32 %v844_v38, %v843_v7  ;;  %v648_v61 = vadd.f32 %v647_v3, %v646_v8  ;;  %v866_v7 = vsel %vm489_vm2, %v746_v47, 0.0  ;;  %v748_v8 = vmul.f32 %v1755_v16, %v1755_v16 }
 0x143   :  { %v675_v16 = vsel %vm489_vm2, %v1813_v46, 0.0 }
 0x144   :  { %v650_v42 = vadd.f32 %v649_v33, %v648_v61  ;;  %v847_v54 = vadd.f32 %v846_v50, %v845_v13  ;;  %v868_v50 = vsel %vm489_vm2, %v747_v24, 0.0  ;;  %v749_v13 = vmul.f32 %v1786_v57, %v1786_v57 }
 0x145   :  { %v870_v2 = vsel %vm489_vm2, %v748_v8, 0.0 }
 0x146   :  { %v652_v58 = vadd.f32 %v651_v15, %v650_v42  ;;  %v849_v18 = vadd.f32 %v848_v20, %v847_v54  ;;  %v750_v42 = vmul.f32 %v1813_v46, %v1813_v46  ;;  %v872_v15 = vsel %vm489_vm2, %v749_v13, 0.0 }
 0x147   :  { %v876_v46 = vsel %vm489_vm2, %v751_v17, 0.0 }
 0x148   :  { %v654_v34 = vadd.f32 %v653_v51, %v652_v58  ;;  %v851_v22 = vadd.f32 %v850_v63, %v849_v18  ;;  %v752_v58 = vmul.f32 %v1868_v60, %v1868_v60  ;;  %v874_v57 = vsel %vm489_vm2, %v750_v42, 0.0 }
 0x149   :  { %v677_v51 = vsel %vm489_vm2, %v1840_v31, 0.0 }
 0x14a   :  { %v656_v23 = vadd.f32 %v655_v55, %v654_v34  ;;  %v853_v27 = vadd.f32 %v852_v49, %v851_v22  ;;  %v878_v49 = vsel %vm489_vm2, %v752_v58, 0.0 }
 0x14c   :  { %v658_v28 = vadd.f32 %v657_v59, %v656_v23  ;;  %v855_v12 = vadd.f32 %v854_v32, %v853_v27 }
 0x14e   :  { %v660_v25 = vadd.f32 %v659_v0, %v658_v28  ;;  %v857_v53 = vadd.f32 %v856_v21, %v855_v12 }
 0x150   :  { %v859_v56 = vadd.f32 %v858_v36, %v857_v53  ;;  %v662_v37 = vadd.f32 %v661_v6, %v660_v25 }
 0x152   :  { %v664_v29 = vadd.f32 %v663_v26, %v662_v37  ;;  %v861_v43 = vadd.f32 %v860_v40, %v859_v56 }
 0x154   :  { %v666_v45 = vadd.f32 %v665_v14, %v664_v29  ;;  %v863_v48 = vadd.f32 %v862_v44, %v861_v43 }
 0x156   :  { %v668_v4 = vadd.f32 %v667_v41, %v666_v45  ;;  %v865_v3 = vadd.f32 %v864_v52, %v863_v48 }
 0x158   :  { %v670_v10 = vadd.f32 %v669_v19, %v668_v4  ;;  %v867_v38 = vadd.f32 %v866_v7, %v865_v3 }
 0x15a   :  { %v672_v61 = vadd.f32 %v671_v11, %v670_v10  ;;  %v869_v33 = vadd.f32 %v868_v50, %v867_v38 }
 0x15c   :  { %v871_v54 = vadd.f32 %v870_v2, %v869_v33  ;;  %v674_v20 = vadd.f32 %v673_v35, %v672_v61 }
 0x15e   :  { %v873_v18 = vadd.f32 %v872_v15, %v871_v54  ;;  %v676_v63 = vadd.f32 %v675_v16, %v674_v20 }
 0x160   :  { %v875_v34 = vadd.f32 %v874_v57, %v873_v18  ;;  %v678_v22 = vadd.f32 %v677_v51, %v676_v63 }
 0x162   :  { %v877_v55 = vadd.f32 %v876_v46, %v875_v34  ;;  %v680_v1 = vadd.f32 %v679_v9, %v678_v22 }
 0x164   :  { %v681_v23 = vrot.slane %v680_v1, 4  ;;  %v879_v27 = vadd.f32 %v878_v49, %v877_v55 }
 0x166   :  { %v682_v32 = vadd.f32 %v681_v23, %v680_v1  ;;  %v880_v59 = vrot.slane %v879_v27, 4 }
 0x168   :  { %v683_v5 = vrot.slane %v682_v32, 2  ;;  %v881_v28 = vadd.f32 %v880_v59, %v879_v27 }
 0x16a   :  { %v684_v12 = vadd.f32 %v683_v5, %v682_v32  ;;  %v882_v21 = vrot.slane %v881_v28, 2 }
 0x16c   :  { %v685_v31 = vrot.slane %v684_v12, 1  ;;  %v883_v0 = vadd.f32 %v882_v21, %v881_v28 }
 0x16e   :  { %v686_v60 = vadd.f32 %v685_v31, %v684_v12  ;;  %v884_v30 = vrot.slane %v883_v0, 1 }
 0x170   :  { %688 = vst.msk [vmem:[%s1962_s3] sm:$0x1] %vm687_vm3, %v686_v60  ;;  %v885_v25 = vadd.f32 %v884_v30, %v883_v0 }
 0x172   :  { %886 = vst.msk [vmem:[%s1963_s4] sm:$0x1] %vm687_vm3, %v885_v25 }

</bundles_post_ra>
